<compile_context>
chip_gen: v7x
topology: tpu7x:2x2x1
jax: 0.10.0
libtpu: 0.0.40
codegen_flags: <defaults>
</compile_context>

<pallas_src>
import functools

import jax
import jax.numpy as jnp
from jax.experimental import pallas as pl
from jax.experimental.pallas import tpu as pltpu


def cross_attention_kernel(q_ref, kv_ref,
                           wq_ref, bq_ref, wk_ref, bk_ref,
                           wv_ref, bv_ref, wo_ref, bo_ref,
                           out_ref, *attn_refs,
                           num_heads, t_q, t_kv):
    attn_ref = attn_refs[0] if attn_refs else None
    H = num_heads
    M_q, D = q_ref.shape          # M_q = block_b * T_q
    hd = D // H
    block_b = M_q // t_q

    # ---- Projections: batch tile folded into M, unsplit (D, D) weights so
    # ---- the MXU sees lane-dense N = D.  (1/sqrt(hd) folded into wq/bq.) ----
    q2 = q_ref[...]               # (block_b*T_q,  D) bf16
    kv2 = kv_ref[...]             # (block_b*T_kv, D) bf16

    Q = jnp.dot(q2, wq_ref[...], preferred_element_type=jnp.float32) + bq_ref[...]
    K = jnp.dot(kv2, wk_ref[...], preferred_element_type=jnp.float32) + bk_ref[...]
    V = jnp.dot(kv2, wv_ref[...], preferred_element_type=jnp.float32) + bv_ref[...]

    # bf16 MXU operands for the attention contractions (f32 accumulation).
    # Reshapes only split the leading/major dim (f32, 8-aligned): cheap.
    Q3 = Q.reshape(block_b, t_q, D).astype(jnp.bfloat16)
    K3 = K.reshape(block_b, t_kv, D).astype(jnp.bfloat16)
    V3 = V.reshape(block_b, t_kv, D).astype(jnp.bfloat16)

    out_acc = jnp.zeros((M_q, D), dtype=jnp.float32)

    # Heads are split only where the math requires it; the per-head views are
    # static lane slices (no activation copies, no broadcast).
    for h in range(H):
        sl = slice(h * hd, (h + 1) * hd)
        Qh = Q3[:, :, sl]                       # (block_b, T_q,  hd)
        Kh = K3[:, :, sl]                       # (block_b, T_kv, hd)
        Vh = V3[:, :, sl]

        # Scores for this head, batched over the batch tile.
        s = jnp.einsum('bqd,bkd->bqk', Qh, Kh,
                       preferred_element_type=jnp.float32)   # (block_b,T_q,T_kv)

        # Numerically stable softmax in f32; exact normalization so the
        # returned probabilities sum to 1 (correctness-review request).
        m = jnp.max(s, axis=-1, keepdims=True)
        e = jnp.exp(s - m)
        w = e / jnp.sum(e, axis=-1, keepdims=True)
        if attn_ref is not None:
            attn_ref[:, h, :, :] = w.astype(attn_ref.dtype)

        ctx = jnp.einsum('bqk,bkd->bqd', w.astype(jnp.bfloat16), Vh,
                         preferred_element_type=jnp.float32)  # (block_b,T_q,hd)

        # Per-head block of the output projection; summing the per-head
        # partials over h is equivalent to transpose(1,2).reshape + out_proj
        # without any in-kernel relayout.
        ctx2 = ctx.reshape(M_q, hd).astype(jnp.bfloat16)
        out_acc = out_acc + jnp.dot(ctx2, wo_ref[h],
                                    preferred_element_type=jnp.float32)

    out_ref[...] = (out_acc + bo_ref[...]).astype(out_ref.dtype)


def _step_vmem_bytes(block_b, t_q, t_kv, d, h, out_bytes, return_attn):
    """Per-grid-step VMEM working set (double-buffered blocked operands)."""
    act = 2 * block_b * (t_q + t_kv) * d                  # bf16 activations
    out = out_bytes * block_b * t_q * d
    attn = 4 * block_b * h * t_q * t_kv if return_attn else 0
    weights = 2 * 4 * d * d + 4 * 4 * d                   # bf16 W + f32 biases
    return 2 * (act + out + attn + weights)


def cross_attention(query, key_value, params, num_heads, *,
                    block_b=None, return_attn=True):
    """query: [B, *extra_dims, D], key_value: [B, T_kv, D]."""
    B = query.shape[0]
    D = query.shape[-1]
    extra_dims = query.shape[1:-1]
    out_dtype = query.dtype
    out_bytes = jnp.dtype(out_dtype).itemsize
    q2 = query.reshape(B, -1, D)
    T_q = q2.shape[1]
    T_kv = key_value.shape[1]
    H = num_heads
    hd = D // H

    wq, bq, wk, bk, wv, bv, wo, bo = params
    scale = 1.0 / (hd ** 0.5)

    # Host-side (one-time XLA) weight prep: torch Linear stores (out, in) ->
    # transpose to (in, out), fold the score scale into wq/bq, bf16 for the
    # MXU.  Projection weights stay UNSPLIT (lane-dense N = D); only out_proj
    # is pre-split per head because its per-head row block is exactly what the
    # context contraction consumes.
    wq_t = (wq * scale).T.astype(jnp.bfloat16)            # (D, D)
    wk_t = wk.T.astype(jnp.bfloat16)
    wv_t = wv.T.astype(jnp.bfloat16)
    wo_h = wo.T.reshape(H, hd, D).astype(jnp.bfloat16)    # (H, hd, D)
    bq_s = (bq * scale).reshape(1, D).astype(jnp.float32)
    bk_s = bk.reshape(1, D).astype(jnp.float32)
    bv_s = bv.reshape(1, D).astype(jnp.float32)
    bo_s = bo.reshape(1, D).astype(jnp.float32)

    # Flatten batch into the row (M) dimension on the host so the kernel's
    # projection matmuls see one large M = block_b * T per grid step.
    q_flat = q2.reshape(B * T_q, D).astype(jnp.bfloat16)
    kv_flat = key_value.reshape(B * T_kv, D).astype(jnp.bfloat16)

    # VMEM- and core-aware batch tile: largest divisor of B whose per-step
    # working set fits a v7x-safe budget, while keeping >= 2 grid steps so
    # both v7x TensorCores get work via the "parallel" grid axis.
    if block_b is None:
        budget = 24 * 2 ** 20
        block_b = 1
        for bb in range(1, B + 1):
            if B % bb:
                continue
            if (bb * T_q) % 8 and bb != B:        # keep (8,128) block rule
                continue
            if (bb * T_kv) % 8 and bb != B:
                continue
            if B > 1 and B // bb < 2:             # >= 2 steps for 2 TCs (v7x)
                continue
            if _step_vmem_bytes(bb, T_q, T_kv, D, H, out_bytes,
                                return_attn) <= budget:
                block_b = bb
    else:
        assert B % block_b == 0, "block_b must divide B"

    need = _step_vmem_bytes(block_b, T_q, T_kv, D, H, out_bytes, return_attn)
    vmem_limit = int(min(48 * 2 ** 20, max(32 * 2 ** 20, 2 * need)))

    kernel = functools.partial(cross_attention_kernel,
                               num_heads=H, t_q=T_q, t_kv=T_kv)

    def const_spec(shape):
        return pl.BlockSpec(shape, lambda b: (0,) * len(shape))

    in_specs = [
        pl.BlockSpec((block_b * T_q, D), lambda b: (b, 0)),
        pl.BlockSpec((block_b * T_kv, D), lambda b: (b, 0)),
        const_spec((D, D)), const_spec((1, D)),    # q_proj
        const_spec((D, D)), const_spec((1, D)),    # k_proj
        const_spec((D, D)), const_spec((1, D)),    # v_proj
        const_spec((H, hd, D)), const_spec((1, D)),  # out_proj
    ]
    out_spec = pl.BlockSpec((block_b * T_q, D), lambda b: (b, 0))
    attn_spec = pl.BlockSpec((block_b, H, T_q, T_kv), lambda b: (b, 0, 0, 0))

    out_struct = jax.ShapeDtypeStruct((B * T_q, D), out_dtype)
    attn_struct = jax.ShapeDtypeStruct((B, H, T_q, T_kv), jnp.float32)

    outs = pl.pallas_call(
        kernel,
        out_shape=(out_struct, attn_struct) if return_attn else out_struct,
        grid=(B // block_b,),
        in_specs=in_specs,
        out_specs=(out_spec, attn_spec) if return_attn else out_spec,
        compiler_params=pltpu.CompilerParams(
            dimension_semantics=("parallel",),
            vmem_limit_bytes=vmem_limit),
    )(q_flat, kv_flat, wq_t, bq_s, wk_t, bk_s, wv_t, bv_s, wo_h, bo_s)

    if return_attn:
        out_flat, attn = outs
    else:
        out_flat, attn = outs, None

    out = out_flat.reshape(B, *extra_dims, D)
    return (out, attn) if return_attn else out


def reference_cross_attention(query, key_value, params, num_heads):
    """Pure-JAX f32 reference mirroring the PyTorch forward."""
    wq, bq, wk, bk, wv, bv, wo, bo = params
    B = query.shape[0]
    D = query.shape[-1]
    extra_dims = query.shape[1:-1]
    head_dim = D // num_heads
    q2 = query.reshape(B, -1, D)
    T_q, T_kv = q2.shape[1], key_value.shape[1]

    Q = q2 @ wq.T + bq
    K = key_value @ wk.T + bk
    V = key_value @ wv.T + bv
    Q = Q.reshape(B, T_q, num_heads, head_dim).transpose(0, 2, 1, 3)
    K = K.reshape(B, T_kv, num_heads, head_dim).transpose(0, 2, 1, 3)
    V = V.reshape(B, T_kv, num_heads, head_dim).transpose(0, 2, 1, 3)
    scores = jnp.einsum("bhqd,bhkd->bhqk", Q, K) / (head_dim ** 0.5)
    w = jax.nn.softmax(scores, axis=-1)
    o = jnp.einsum("bhqk,bhkd->bhqd", w, V)
    o = o.transpose(0, 2, 1, 3).reshape(B, T_q, D)
    out = o @ wo.T + bo
    return out.reshape(B, *extra_dims, D), w


if __name__ == "__main__":
    B, D, H = 2, 32, 4          # embed_dim=32, num_heads=4 -> head_dim=8
    extra = (4, 4)              # query has extra spatial dims -> T_q = 16
    T_kv = 8

    key = jax.random.PRNGKey(0)
    ks = jax.random.split(key, 10)
    query = jax.random.normal(ks[0], (B, *extra, D), dtype=jnp.float32)
    key_value = jax.random.normal(ks[1], (B, T_kv, D), dtype=jnp.float32)

    init_scale = 1.0 / (D ** 0.5)
    wq = jax.random.uniform(ks[2], (D, D), minval=-init_scale, maxval=init_scale)
    bq = jax.random.uniform(ks[3], (D,), minval=-init_scale, maxval=init_scale)
    wk = jax.random.uniform(ks[4], (D, D), minval=-init_scale, maxval=init_scale)
    bk = jax.random.uniform(ks[5], (D,), minval=-init_scale, maxval=init_scale)
    wv = jax.random.uniform(ks[6], (D, D), minval=-init_scale, maxval=init_scale)
    bv = jax.random.uniform(ks[7], (D,), minval=-init_scale, maxval=init_scale)
    wo = jax.random.uniform(ks[8], (D, D), minval=-init_scale, maxval=init_scale)
    bo = jax.random.uniform(ks[9], (D,), minval=-init_scale, maxval=init_scale)
    params = (wq, bq, wk, bk, wv, bv, wo, bo)

    out, attn = cross_attention(query, key_value, params, num_heads=H)
    jax.block_until_ready((out, attn))

    out_ref, attn_ref = reference_cross_attention(query, key_value, params, num_heads=H)
    assert out.shape == (B, *extra, D)
    assert attn.shape == (B, H, extra[0] * extra[1], T_kv)
    # Tolerances relaxed vs. the f32 reference because the kernel intentionally
    # uses bf16 MXU operands (f32 accumulation) per the performance guidance.
    assert jnp.allclose(out, out_ref, atol=2e-2, rtol=2e-2)
    assert jnp.allclose(attn, attn_ref, atol=1e-2, rtol=1e-2)

    print("KERNEL_OK")
</pallas_src>

<mosaic_0001>
module attributes {stable_mosaic.version = 11 : i64} {
  func.func @cross_attention_kernel(%arg0: i32, %arg1: memref<16x32xbf16, #tpu.memory_space<vmem>>, %arg2: memref<8x32xbf16, #tpu.memory_space<vmem>>, %arg3: memref<32x32xbf16, #tpu.memory_space<vmem>>, %arg4: memref<1x32xf32, #tpu.memory_space<vmem>>, %arg5: memref<32x32xbf16, #tpu.memory_space<vmem>>, %arg6: memref<1x32xf32, #tpu.memory_space<vmem>>, %arg7: memref<32x32xbf16, #tpu.memory_space<vmem>>, %arg8: memref<1x32xf32, #tpu.memory_space<vmem>>, %arg9: memref<4x8x32xbf16, #tpu.memory_space<vmem>>, %arg10: memref<1x32xf32, #tpu.memory_space<vmem>>, %arg11: memref<16x32xf32, #tpu.memory_space<vmem>>, %arg12: memref<1x4x16x8xf32, #tpu.memory_space<vmem>>) attributes {dimension_semantics = [#tpu.dimension_semantics<parallel>], iteration_bounds = array<i64: 2>, scalar_prefetch = 0 : i64, scratch_operands = 0 : i64, tpu.core_type = #tpu.core_type<tc>, window_params = [{transform_indices = @transform_0, window_bounds = array<i64: 16, 32>}, {transform_indices = @transform_1, window_bounds = array<i64: 8, 32>}, {pipeline_mode = #tpu.pipeline_mode<synchronous>, transform_indices = @transform_2, window_bounds = array<i64: 32, 32>}, {pipeline_mode = #tpu.pipeline_mode<synchronous>, transform_indices = @transform_3, window_bounds = array<i64: 1, 32>}, {pipeline_mode = #tpu.pipeline_mode<synchronous>, transform_indices = @transform_4, window_bounds = array<i64: 32, 32>}, {pipeline_mode = #tpu.pipeline_mode<synchronous>, transform_indices = @transform_5, window_bounds = array<i64: 1, 32>}, {pipeline_mode = #tpu.pipeline_mode<synchronous>, transform_indices = @transform_6, window_bounds = array<i64: 32, 32>}, {pipeline_mode = #tpu.pipeline_mode<synchronous>, transform_indices = @transform_7, window_bounds = array<i64: 1, 32>}, {pipeline_mode = #tpu.pipeline_mode<synchronous>, transform_indices = @transform_8, window_bounds = array<i64: 4, 8, 32>}, {pipeline_mode = #tpu.pipeline_mode<synchronous>, transform_indices = @transform_9, window_bounds = array<i64: 1, 32>}, {transform_indices = @transform_10, window_bounds = array<i64: 16, 32>}, {transform_indices = @transform_11, window_bounds = array<i64: 1, 4, 16, 8>}]} {
    %c0 = arith.constant 0 : index
    %c0_0 = arith.constant 0 : index
    %0 = vector.load %arg1[%c0, %c0_0] : memref<16x32xbf16, #tpu.memory_space<vmem>>, vector<16x32xbf16>
    %c0_1 = arith.constant 0 : index
    %c0_2 = arith.constant 0 : index
    %1 = vector.load %arg2[%c0_1, %c0_2] : memref<8x32xbf16, #tpu.memory_space<vmem>>, vector<8x32xbf16>
    %c0_3 = arith.constant 0 : index
    %c0_4 = arith.constant 0 : index
    %2 = vector.load %arg3[%c0_3, %c0_4] : memref<32x32xbf16, #tpu.memory_space<vmem>>, vector<32x32xbf16>
    %cst = arith.constant dense<0.000000e+00> : vector<16x32xf32>
    %3 = tpu.matmul %0, %2, %cst {dimension_numbers = #tpu.dot_dimension_numbers<[1], [0], [0], [1], [0, 0, 1, 1], [], []>} : vector<16x32xbf16>, vector<32x32xbf16>, vector<16x32xf32> -> vector<16x32xf32>
    %c0_5 = arith.constant 0 : index
    %c0_6 = arith.constant 0 : index
    %4 = vector.load %arg4[%c0_5, %c0_6] : memref<1x32xf32, #tpu.memory_space<vmem>>, vector<1x32xf32>
    %5 = vector.broadcast %4 : vector<1x32xf32> to vector<16x32xf32>
    %6 = arith.addf %3, %5 : vector<16x32xf32>
    %c0_7 = arith.constant 0 : index
    %c0_8 = arith.constant 0 : index
    %7 = vector.load %arg5[%c0_7, %c0_8] : memref<32x32xbf16, #tpu.memory_space<vmem>>, vector<32x32xbf16>
    %cst_9 = arith.constant dense<0.000000e+00> : vector<8x32xf32>
    %8 = tpu.matmul %1, %7, %cst_9 {dimension_numbers = #tpu.dot_dimension_numbers<[1], [0], [0], [1], [0, 0, 1, 1], [], []>} : vector<8x32xbf16>, vector<32x32xbf16>, vector<8x32xf32> -> vector<8x32xf32>
    %c0_10 = arith.constant 0 : index
    %c0_11 = arith.constant 0 : index
    %9 = vector.load %arg6[%c0_10, %c0_11] : memref<1x32xf32, #tpu.memory_space<vmem>>, vector<1x32xf32>
    %10 = vector.broadcast %9 : vector<1x32xf32> to vector<8x32xf32>
    %11 = arith.addf %8, %10 : vector<8x32xf32>
    %c0_12 = arith.constant 0 : index
    %c0_13 = arith.constant 0 : index
    %12 = vector.load %arg7[%c0_12, %c0_13] : memref<32x32xbf16, #tpu.memory_space<vmem>>, vector<32x32xbf16>
    %cst_14 = arith.constant dense<0.000000e+00> : vector<8x32xf32>
    %13 = tpu.matmul %1, %12, %cst_14 {dimension_numbers = #tpu.dot_dimension_numbers<[1], [0], [0], [1], [0, 0, 1, 1], [], []>} : vector<8x32xbf16>, vector<32x32xbf16>, vector<8x32xf32> -> vector<8x32xf32>
    %c0_15 = arith.constant 0 : index
    %c0_16 = arith.constant 0 : index
    %14 = vector.load %arg8[%c0_15, %c0_16] : memref<1x32xf32, #tpu.memory_space<vmem>>, vector<1x32xf32>
    %15 = vector.broadcast %14 : vector<1x32xf32> to vector<8x32xf32>
    %16 = arith.addf %13, %15 : vector<8x32xf32>
    %17 = vector.shape_cast %6 : vector<16x32xf32> to vector<1x16x32xf32>
    %18 = arith.truncf %17 : vector<1x16x32xf32> to vector<1x16x32xbf16>
    %19 = vector.shape_cast %11 : vector<8x32xf32> to vector<1x8x32xf32>
    %20 = arith.truncf %19 : vector<1x8x32xf32> to vector<1x8x32xbf16>
    %21 = vector.shape_cast %16 : vector<8x32xf32> to vector<1x8x32xf32>
    %22 = arith.truncf %21 : vector<1x8x32xf32> to vector<1x8x32xbf16>
    %cst_17 = arith.constant 0.000000e+00 : f32
    %23 = vector.broadcast %cst_17 : f32 to vector<16x32xf32>
    %24 = vector.extract_strided_slice %18 {offsets = [0, 0, 0], sizes = [1, 16, 8], strides = [1, 1, 1]} : vector<1x16x32xbf16> to vector<1x16x8xbf16>
    %25 = vector.extract_strided_slice %20 {offsets = [0, 0, 0], sizes = [1, 8, 8], strides = [1, 1, 1]} : vector<1x8x32xbf16> to vector<1x8x8xbf16>
    %26 = vector.extract_strided_slice %22 {offsets = [0, 0, 0], sizes = [1, 8, 8], strides = [1, 1, 1]} : vector<1x8x32xbf16> to vector<1x8x8xbf16>
    "tpu.trace_start"() <{level = 10 : i32, message = "bqd,bkd->bqk"}> : () -> ()
    %cst_18 = arith.constant dense<0.000000e+00> : vector<1x16x8xf32>
    %27 = tpu.matmul %24, %25, %cst_18 {dimension_numbers = #tpu.dot_dimension_numbers<[2], [2], [1], [1], [0, 0, 0, 1, 1, 1], [0], [0]>} : vector<1x16x8xbf16>, vector<1x8x8xbf16>, vector<1x16x8xf32> -> vector<1x16x8xf32>
    "tpu.trace_stop"() : () -> ()
    %cst_19 = arith.constant dense<0xFF800000> : vector<1x16xf32>
    %28 = vector.multi_reduction <maximumf>, %27, %cst_19 [2] : vector<1x16x8xf32> to vector<1x16xf32>
    %29 = vector.shape_cast %28 : vector<1x16xf32> to vector<1x16x1xf32>
    %30 = vector.broadcast %29 : vector<1x16x1xf32> to vector<1x16x8xf32>
    %31 = arith.subf %27, %30 : vector<1x16x8xf32>
    %32 = math.exp %31 : vector<1x16x8xf32>
    %cst_20 = arith.constant dense<0.000000e+00> : vector<1x16xf32>
    %33 = vector.multi_reduction <add>, %32, %cst_20 [2] : vector<1x16x8xf32> to vector<1x16xf32>
    %34 = vector.shape_cast %33 : vector<1x16xf32> to vector<1x16x1xf32>
    %35 = vector.broadcast %34 : vector<1x16x1xf32> to vector<1x16x8xf32>
    %36 = arith.divf %32, %35 : vector<1x16x8xf32>
    %c0_21 = arith.constant 0 : index
    %c0_22 = arith.constant 0 : index
    %c0_23 = arith.constant 0 : index
    %c0_24 = arith.constant 0 : index
    %37 = vector.load %arg12[%c0_21, %c0_22, %c0_23, %c0_24] : memref<1x4x16x8xf32, #tpu.memory_space<vmem>>, vector<1x1x16x8xf32>
    %38 = vector.shape_cast %37 : vector<1x1x16x8xf32> to vector<1x16x8xf32>
    %39 = vector.shape_cast %36 : vector<1x16x8xf32> to vector<1x1x16x8xf32>
    tpu.vector_store %arg12[%c0_21, %c0_22, %c0_23, %c0_24], %39 {strides = array<i32>} : memref<1x4x16x8xf32, #tpu.memory_space<vmem>>, vector<1x1x16x8xf32>,
    %40 = arith.truncf %36 : vector<1x16x8xf32> to vector<1x16x8xbf16>
    "tpu.trace_start"() <{level = 10 : i32, message = "bqk,bkd->bqd"}> : () -> ()
    %cst_25 = arith.constant dense<0.000000e+00> : vector<1x16x8xf32>
    %41 = tpu.matmul %40, %26, %cst_25 {dimension_numbers = #tpu.dot_dimension_numbers<[2], [1], [1], [2], [0, 0, 0, 1, 1, 2], [0], [0]>} : vector<1x16x8xbf16>, vector<1x8x8xbf16>, vector<1x16x8xf32> -> vector<1x16x8xf32>
    "tpu.trace_stop"() : () -> ()
    %42 = vector.shape_cast %41 : vector<1x16x8xf32> to vector<16x8xf32>
    %43 = arith.truncf %42 : vector<16x8xf32> to vector<16x8xbf16>
    %c0_26 = arith.constant 0 : index
    %c0_27 = arith.constant 0 : index
    %c0_28 = arith.constant 0 : index
    %44 = vector.load %arg9[%c0_26, %c0_27, %c0_28] : memref<4x8x32xbf16, #tpu.memory_space<vmem>>, vector<1x8x32xbf16>
    %45 = vector.shape_cast %44 : vector<1x8x32xbf16> to vector<8x32xbf16>
    %cst_29 = arith.constant dense<0.000000e+00> : vector<16x32xf32>
    %46 = tpu.matmul %43, %45, %cst_29 {dimension_numbers = #tpu.dot_dimension_numbers<[1], [0], [0], [1], [0, 0, 1, 1], [], []>} : vector<16x8xbf16>, vector<8x32xbf16>, vector<16x32xf32> -> vector<16x32xf32>
    %47 = arith.addf %23, %46 : vector<16x32xf32>
    %48 = vector.extract_strided_slice %18 {offsets = [0, 0, 8], sizes = [1, 16, 8], strides = [1, 1, 1]} : vector<1x16x32xbf16> to vector<1x16x8xbf16>
    %49 = vector.extract_strided_slice %20 {offsets = [0, 0, 8], sizes = [1, 8, 8], strides = [1, 1, 1]} : vector<1x8x32xbf16> to vector<1x8x8xbf16>
    %50 = vector.extract_strided_slice %22 {offsets = [0, 0, 8], sizes = [1, 8, 8], strides = [1, 1, 1]} : vector<1x8x32xbf16> to vector<1x8x8xbf16>
    "tpu.trace_start"() <{level = 10 : i32, message = "bqd,bkd->bqk"}> : () -> ()
    %cst_30 = arith.constant dense<0.000000e+00> : vector<1x16x8xf32>
    %51 = tpu.matmul %48, %49, %cst_30 {dimension_numbers = #tpu.dot_dimension_numbers<[2], [2], [1], [1], [0, 0, 0, 1, 1, 1], [0], [0]>} : vector<1x16x8xbf16>, vector<1x8x8xbf16>, vector<1x16x8xf32> -> vector<1x16x8xf32>
    "tpu.trace_stop"() : () -> ()
    %cst_31 = arith.constant dense<0xFF800000> : vector<1x16xf32>
    %52 = vector.multi_reduction <maximumf>, %51, %cst_31 [2] : vector<1x16x8xf32> to vector<1x16xf32>
    %53 = vector.shape_cast %52 : vector<1x16xf32> to vector<1x16x1xf32>
    %54 = vector.broadcast %53 : vector<1x16x1xf32> to vector<1x16x8xf32>
    %55 = arith.subf %51, %54 : vector<1x16x8xf32>
    %56 = math.exp %55 : vector<1x16x8xf32>
    %cst_32 = arith.constant dense<0.000000e+00> : vector<1x16xf32>
    %57 = vector.multi_reduction <add>, %56, %cst_32 [2] : vector<1x16x8xf32> to vector<1x16xf32>
    %58 = vector.shape_cast %57 : vector<1x16xf32> to vector<1x16x1xf32>
    %59 = vector.broadcast %58 : vector<1x16x1xf32> to vector<1x16x8xf32>
    %60 = arith.divf %56, %59 : vector<1x16x8xf32>
    %c0_33 = arith.constant 0 : index
    %c1 = arith.constant 1 : index
    %c0_34 = arith.constant 0 : index
    %c0_35 = arith.constant 0 : index
    %61 = vector.load %arg12[%c0_33, %c1, %c0_34, %c0_35] : memref<1x4x16x8xf32, #tpu.memory_space<vmem>>, vector<1x1x16x8xf32>
    %62 = vector.shape_cast %61 : vector<1x1x16x8xf32> to vector<1x16x8xf32>
    %63 = vector.shape_cast %60 : vector<1x16x8xf32> to vector<1x1x16x8xf32>
    tpu.vector_store %arg12[%c0_33, %c1, %c0_34, %c0_35], %63 {strides = array<i32>} : memref<1x4x16x8xf32, #tpu.memory_space<vmem>>, vector<1x1x16x8xf32>,
    %64 = arith.truncf %60 : vector<1x16x8xf32> to vector<1x16x8xbf16>
    "tpu.trace_start"() <{level = 10 : i32, message = "bqk,bkd->bqd"}> : () -> ()
    %cst_36 = arith.constant dense<0.000000e+00> : vector<1x16x8xf32>
    %65 = tpu.matmul %64, %50, %cst_36 {dimension_numbers = #tpu.dot_dimension_numbers<[2], [1], [1], [2], [0, 0, 0, 1, 1, 2], [0], [0]>} : vector<1x16x8xbf16>, vector<1x8x8xbf16>, vector<1x16x8xf32> -> vector<1x16x8xf32>
    "tpu.trace_stop"() : () -> ()
    %66 = vector.shape_cast %65 : vector<1x16x8xf32> to vector<16x8xf32>
    %67 = arith.truncf %66 : vector<16x8xf32> to vector<16x8xbf16>
    %c1_37 = arith.constant 1 : index
    %c0_38 = arith.constant 0 : index
    %c0_39 = arith.constant 0 : index
    %68 = vector.load %arg9[%c1_37, %c0_38, %c0_39] : memref<4x8x32xbf16, #tpu.memory_space<vmem>>, vector<1x8x32xbf16>
    %69 = vector.shape_cast %68 : vector<1x8x32xbf16> to vector<8x32xbf16>
    %cst_40 = arith.constant dense<0.000000e+00> : vector<16x32xf32>
    %70 = tpu.matmul %67, %69, %cst_40 {dimension_numbers = #tpu.dot_dimension_numbers<[1], [0], [0], [1], [0, 0, 1, 1], [], []>} : vector<16x8xbf16>, vector<8x32xbf16>, vector<16x32xf32> -> vector<16x32xf32>
    %71 = arith.addf %47, %70 : vector<16x32xf32>
    %72 = vector.extract_strided_slice %18 {offsets = [0, 0, 16], sizes = [1, 16, 8], strides = [1, 1, 1]} : vector<1x16x32xbf16> to vector<1x16x8xbf16>
    %73 = vector.extract_strided_slice %20 {offsets = [0, 0, 16], sizes = [1, 8, 8], strides = [1, 1, 1]} : vector<1x8x32xbf16> to vector<1x8x8xbf16>
    %74 = vector.extract_strided_slice %22 {offsets = [0, 0, 16], sizes = [1, 8, 8], strides = [1, 1, 1]} : vector<1x8x32xbf16> to vector<1x8x8xbf16>
    "tpu.trace_start"() <{level = 10 : i32, message = "bqd,bkd->bqk"}> : () -> ()
    %cst_41 = arith.constant dense<0.000000e+00> : vector<1x16x8xf32>
    %75 = tpu.matmul %72, %73, %cst_41 {dimension_numbers = #tpu.dot_dimension_numbers<[2], [2], [1], [1], [0, 0, 0, 1, 1, 1], [0], [0]>} : vector<1x16x8xbf16>, vector<1x8x8xbf16>, vector<1x16x8xf32> -> vector<1x16x8xf32>
    "tpu.trace_stop"() : () -> ()
    %cst_42 = arith.constant dense<0xFF800000> : vector<1x16xf32>
    %76 = vector.multi_reduction <maximumf>, %75, %cst_42 [2] : vector<1x16x8xf32> to vector<1x16xf32>
    %77 = vector.shape_cast %76 : vector<1x16xf32> to vector<1x16x1xf32>
    %78 = vector.broadcast %77 : vector<1x16x1xf32> to vector<1x16x8xf32>
    %79 = arith.subf %75, %78 : vector<1x16x8xf32>
    %80 = math.exp %79 : vector<1x16x8xf32>
    %cst_43 = arith.constant dense<0.000000e+00> : vector<1x16xf32>
    %81 = vector.multi_reduction <add>, %80, %cst_43 [2] : vector<1x16x8xf32> to vector<1x16xf32>
    %82 = vector.shape_cast %81 : vector<1x16xf32> to vector<1x16x1xf32>
    %83 = vector.broadcast %82 : vector<1x16x1xf32> to vector<1x16x8xf32>
    %84 = arith.divf %80, %83 : vector<1x16x8xf32>
    %c0_44 = arith.constant 0 : index
    %c2 = arith.constant 2 : index
    %c0_45 = arith.constant 0 : index
    %c0_46 = arith.constant 0 : index
    %85 = vector.load %arg12[%c0_44, %c2, %c0_45, %c0_46] : memref<1x4x16x8xf32, #tpu.memory_space<vmem>>, vector<1x1x16x8xf32>
    %86 = vector.shape_cast %85 : vector<1x1x16x8xf32> to vector<1x16x8xf32>
    %87 = vector.shape_cast %84 : vector<1x16x8xf32> to vector<1x1x16x8xf32>
    tpu.vector_store %arg12[%c0_44, %c2, %c0_45, %c0_46], %87 {strides = array<i32>} : memref<1x4x16x8xf32, #tpu.memory_space<vmem>>, vector<1x1x16x8xf32>,
    %88 = arith.truncf %84 : vector<1x16x8xf32> to vector<1x16x8xbf16>
    "tpu.trace_start"() <{level = 10 : i32, message = "bqk,bkd->bqd"}> : () -> ()
    %cst_47 = arith.constant dense<0.000000e+00> : vector<1x16x8xf32>
    %89 = tpu.matmul %88, %74, %cst_47 {dimension_numbers = #tpu.dot_dimension_numbers<[2], [1], [1], [2], [0, 0, 0, 1, 1, 2], [0], [0]>} : vector<1x16x8xbf16>, vector<1x8x8xbf16>, vector<1x16x8xf32> -> vector<1x16x8xf32>
    "tpu.trace_stop"() : () -> ()
    %90 = vector.shape_cast %89 : vector<1x16x8xf32> to vector<16x8xf32>
    %91 = arith.truncf %90 : vector<16x8xf32> to vector<16x8xbf16>
    %c2_48 = arith.constant 2 : index
    %c0_49 = arith.constant 0 : index
    %c0_50 = arith.constant 0 : index
    %92 = vector.load %arg9[%c2_48, %c0_49, %c0_50] : memref<4x8x32xbf16, #tpu.memory_space<vmem>>, vector<1x8x32xbf16>
    %93 = vector.shape_cast %92 : vector<1x8x32xbf16> to vector<8x32xbf16>
    %cst_51 = arith.constant dense<0.000000e+00> : vector<16x32xf32>
    %94 = tpu.matmul %91, %93, %cst_51 {dimension_numbers = #tpu.dot_dimension_numbers<[1], [0], [0], [1], [0, 0, 1, 1], [], []>} : vector<16x8xbf16>, vector<8x32xbf16>, vector<16x32xf32> -> vector<16x32xf32>
    %95 = arith.addf %71, %94 : vector<16x32xf32>
    %96 = vector.extract_strided_slice %18 {offsets = [0, 0, 24], sizes = [1, 16, 8], strides = [1, 1, 1]} : vector<1x16x32xbf16> to vector<1x16x8xbf16>
    %97 = vector.extract_strided_slice %20 {offsets = [0, 0, 24], sizes = [1, 8, 8], strides = [1, 1, 1]} : vector<1x8x32xbf16> to vector<1x8x8xbf16>
    %98 = vector.extract_strided_slice %22 {offsets = [0, 0, 24], sizes = [1, 8, 8], strides = [1, 1, 1]} : vector<1x8x32xbf16> to vector<1x8x8xbf16>
    "tpu.trace_start"() <{level = 10 : i32, message = "bqd,bkd->bqk"}> : () -> ()
    %cst_52 = arith.constant dense<0.000000e+00> : vector<1x16x8xf32>
    %99 = tpu.matmul %96, %97, %cst_52 {dimension_numbers = #tpu.dot_dimension_numbers<[2], [2], [1], [1], [0, 0, 0, 1, 1, 1], [0], [0]>} : vector<1x16x8xbf16>, vector<1x8x8xbf16>, vector<1x16x8xf32> -> vector<1x16x8xf32>
    "tpu.trace_stop"() : () -> ()
    %cst_53 = arith.constant dense<0xFF800000> : vector<1x16xf32>
    %100 = vector.multi_reduction <maximumf>, %99, %cst_53 [2] : vector<1x16x8xf32> to vector<1x16xf32>
    %101 = vector.shape_cast %100 : vector<1x16xf32> to vector<1x16x1xf32>
    %102 = vector.broadcast %101 : vector<1x16x1xf32> to vector<1x16x8xf32>
    %103 = arith.subf %99, %102 : vector<1x16x8xf32>
    %104 = math.exp %103 : vector<1x16x8xf32>
    %cst_54 = arith.constant dense<0.000000e+00> : vector<1x16xf32>
    %105 = vector.multi_reduction <add>, %104, %cst_54 [2] : vector<1x16x8xf32> to vector<1x16xf32>
    %106 = vector.shape_cast %105 : vector<1x16xf32> to vector<1x16x1xf32>
    %107 = vector.broadcast %106 : vector<1x16x1xf32> to vector<1x16x8xf32>
    %108 = arith.divf %104, %107 : vector<1x16x8xf32>
    %c0_55 = arith.constant 0 : index
    %c3 = arith.constant 3 : index
    %c0_56 = arith.constant 0 : index
    %c0_57 = arith.constant 0 : index
    %109 = vector.load %arg12[%c0_55, %c3, %c0_56, %c0_57] : memref<1x4x16x8xf32, #tpu.memory_space<vmem>>, vector<1x1x16x8xf32>
    %110 = vector.shape_cast %109 : vector<1x1x16x8xf32> to vector<1x16x8xf32>
    %111 = vector.shape_cast %108 : vector<1x16x8xf32> to vector<1x1x16x8xf32>
    tpu.vector_store %arg12[%c0_55, %c3, %c0_56, %c0_57], %111 {strides = array<i32>} : memref<1x4x16x8xf32, #tpu.memory_space<vmem>>, vector<1x1x16x8xf32>,
    %112 = arith.truncf %108 : vector<1x16x8xf32> to vector<1x16x8xbf16>
    "tpu.trace_start"() <{level = 10 : i32, message = "bqk,bkd->bqd"}> : () -> ()
    %cst_58 = arith.constant dense<0.000000e+00> : vector<1x16x8xf32>
    %113 = tpu.matmul %112, %98, %cst_58 {dimension_numbers = #tpu.dot_dimension_numbers<[2], [1], [1], [2], [0, 0, 0, 1, 1, 2], [0], [0]>} : vector<1x16x8xbf16>, vector<1x8x8xbf16>, vector<1x16x8xf32> -> vector<1x16x8xf32>
    "tpu.trace_stop"() : () -> ()
    %114 = vector.shape_cast %113 : vector<1x16x8xf32> to vector<16x8xf32>
    %115 = arith.truncf %114 : vector<16x8xf32> to vector<16x8xbf16>
    %c3_59 = arith.constant 3 : index
    %c0_60 = arith.constant 0 : index
    %c0_61 = arith.constant 0 : index
    %116 = vector.load %arg9[%c3_59, %c0_60, %c0_61] : memref<4x8x32xbf16, #tpu.memory_space<vmem>>, vector<1x8x32xbf16>
    %117 = vector.shape_cast %116 : vector<1x8x32xbf16> to vector<8x32xbf16>
    %cst_62 = arith.constant dense<0.000000e+00> : vector<16x32xf32>
    %118 = tpu.matmul %115, %117, %cst_62 {dimension_numbers = #tpu.dot_dimension_numbers<[1], [0], [0], [1], [0, 0, 1, 1], [], []>} : vector<16x8xbf16>, vector<8x32xbf16>, vector<16x32xf32> -> vector<16x32xf32>
    %119 = arith.addf %95, %118 : vector<16x32xf32>
    %c0_63 = arith.constant 0 : index
    %c0_64 = arith.constant 0 : index
    %120 = vector.load %arg10[%c0_63, %c0_64] : memref<1x32xf32, #tpu.memory_space<vmem>>, vector<1x32xf32>
    %121 = vector.broadcast %120 : vector<1x32xf32> to vector<16x32xf32>
    %122 = arith.addf %119, %121 : vector<16x32xf32>
    %c0_65 = arith.constant 0 : index
    %c0_66 = arith.constant 0 : index
    %123 = vector.load %arg11[%c0_65, %c0_66] : memref<16x32xf32, #tpu.memory_space<vmem>>, vector<16x32xf32>
    tpu.vector_store %arg11[%c0_65, %c0_66], %122 {strides = array<i32>} : memref<16x32xf32, #tpu.memory_space<vmem>>, vector<16x32xf32>,
    return
  }
  func.func @transform_0(%arg0: i32) -> (i32, i32) {
    %c0_i32 = arith.constant 0 : i32
    %c0_i32_0 = arith.constant 0 : i32
    return %arg0, %c0_i32 : i32, i32
  }
  func.func @transform_1(%arg0: i32) -> (i32, i32) {
    %c0_i32 = arith.constant 0 : i32
    %c0_i32_0 = arith.constant 0 : i32
    return %arg0, %c0_i32 : i32, i32
  }
  func.func @transform_2(%arg0: i32) -> (i32, i32) {
    %c0_i32 = arith.constant 0 : i32
    %c0_i32_0 = arith.constant 0 : i32
    %c0_i32_1 = arith.constant 0 : i32
    return %c0_i32, %c0_i32_0 : i32, i32
  }
  func.func @transform_3(%arg0: i32) -> (i32, i32) {
    %c0_i32 = arith.constant 0 : i32
    %c0_i32_0 = arith.constant 0 : i32
    %c0_i32_1 = arith.constant 0 : i32
    return %c0_i32, %c0_i32_0 : i32, i32
  }
  func.func @transform_4(%arg0: i32) -> (i32, i32) {
    %c0_i32 = arith.constant 0 : i32
    %c0_i32_0 = arith.constant 0 : i32
    %c0_i32_1 = arith.constant 0 : i32
    return %c0_i32, %c0_i32_0 : i32, i32
  }
  func.func @transform_5(%arg0: i32) -> (i32, i32) {
    %c0_i32 = arith.constant 0 : i32
    %c0_i32_0 = arith.constant 0 : i32
    %c0_i32_1 = arith.constant 0 : i32
    return %c0_i32, %c0_i32_0 : i32, i32
  }
  func.func @transform_6(%arg0: i32) -> (i32, i32) {
    %c0_i32 = arith.constant 0 : i32
    %c0_i32_0 = arith.constant 0 : i32
    %c0_i32_1 = arith.constant 0 : i32
    return %c0_i32, %c0_i32_0 : i32, i32
  }
  func.func @transform_7(%arg0: i32) -> (i32, i32) {
    %c0_i32 = arith.constant 0 : i32
    %c0_i32_0 = arith.constant 0 : i32
    %c0_i32_1 = arith.constant 0 : i32
    return %c0_i32, %c0_i32_0 : i32, i32
  }
  func.func @transform_8(%arg0: i32) -> (i32, i32, i32) {
    %c0_i32 = arith.constant 0 : i32
    %c0_i32_0 = arith.constant 0 : i32
    %c0_i32_1 = arith.constant 0 : i32
    %c0_i32_2 = arith.constant 0 : i32
    return %c0_i32, %c0_i32_0, %c0_i32_1 : i32, i32, i32
  }
  func.func @transform_9(%arg0: i32) -> (i32, i32) {
    %c0_i32 = arith.constant 0 : i32
    %c0_i32_0 = arith.constant 0 : i32
    %c0_i32_1 = arith.constant 0 : i32
    return %c0_i32, %c0_i32_0 : i32, i32
  }
  func.func @transform_10(%arg0: i32) -> (i32, i32) {
    %c0_i32 = arith.constant 0 : i32
    %c0_i32_0 = arith.constant 0 : i32
    return %arg0, %c0_i32 : i32, i32
  }
  func.func @transform_11(%arg0: i32) -> (i32, i32, i32, i32) {
    %c0_i32 = arith.constant 0 : i32
    %c0_i32_0 = arith.constant 0 : i32
    %c0_i32_1 = arith.constant 0 : i32
    %c0_i32_2 = arith.constant 0 : i32
    return %arg0, %c0_i32, %c0_i32_0, %c0_i32_1 : i32, i32, i32, i32
  }
}

</mosaic_0001>

<bundles_post_ra>
// kernel: tpu_custom_call.1
= control target key start
LH: loop header
LB: loop body
LE: loop exit
PB: predicated region body
PF: predicated region fallthrough
CT: control target
= control target key end

     0   :  { %s2691_s0 = inlined_call_operand.hbm [shape: bf16[32,32], index: 0, kind: input, shape index: {}]   ;;  %s2692_s1 = inlined_call_operand.hbm [shape: bf16[16,32], index: 1, kind: input, shape index: {}]   ;;  %s2693_s2 = inlined_call_operand.hbm [shape: bf16[32,32], index: 2, kind: input, shape index: {}]   ;;  %s2694_s3 = inlined_call_operand.vmem [shape: f32[1,32], index: 3, kind: input, shape index: {}]   ;;  %s2695_s4 = inlined_call_operand.hbm [shape: bf16[32,32], index: 4, kind: input, shape index: {}]   ;;  %s2696_s5 = inlined_call_operand.vmem [shape: f32[1,32], index: 5, kind: input, shape index: {}]   ;;  %s2697_s6 = inlined_call_operand.vmem [shape: bf16[32,32], index: 6, kind: input, shape index: {}]   ;;  %s2698_s7 = inlined_call_operand.vmem [shape: f32[1,32], index: 7, kind: input, shape index: {}]   ;;  %s2699_s8 = inlined_call_operand.hbm [shape: bf16[4,8,32], index: 8, kind: input, shape index: {}]   ;;  %s2700_s9 = inlined_call_operand.vmem [shape: f32[1,32], index: 9, kind: input, shape index: {}]   ;;  %s2701_s10 = inlined_call_operand.hbm [shape: f32[32,32], index: 10, kind: output, shape index: {0}]   ;;  %s2702_s11 = inlined_call_operand.vmem [shape: f32[2,4,16,8], index: 11, kind: output, shape index: {1}]  }
   0x1   :  { %2711 = sst [smem:[#allocation19_spill]] %s2691_s0 }
   0x2   :  { %2712 = sst [smem:[#allocation20_spill]] %s2693_s2 }
   0x3   :  { %2713 = sst [smem:[#allocation21_spill]] %s2695_s4 }
   0x4   :  { %2714 = sst [smem:[#allocation22_spill]] %s2699_s8 }
   0x5   :  { %2715 = sst [smem:[#allocation23_spill]] %s2700_s9 }
   0x6   :  { %2716 = sst [smem:[#allocation24_spill]] %s2701_s10 }
   0x7   :  { %2717 = sst [smem:[#allocation25_spill]] %s2702_s11 }
   0x8   :  { %17 = vsyncpa [#allocation3], 0 }
   0x9   :  { %19 = vsyncpa [#allocation3 + $0x1], 0 }
   0xa   :  { %20 = vsyncpa [#allocation6], 0 }
   0xb   :  { %22 = vsyncpa [#allocation6 + $0x1], 0 }
   0xc   :  { %23 = vsyncpa [#allocation9], 0 }
   0xd   :  { %24 = vsyncpa [#allocation4], 0 }
   0xe   :  { %26 = vsyncpa [#allocation4 + $0x1], 0  ;;  %s2214_s17 = smov 0   ;;  %s2216_s18 = smov 0  }
   0xf   :  { %s2218_s19 = smov 0   ;;  %s2220_s20 = smov 0  }
  0x10 LB: > { %2718 = sst [smem:[#allocation17_spill]] %s2125_s17  ;;  %s2235_s21 = sadd.s32 4294967295, %s2137_s20   ;;  %s2137_s20 = sphi %s2220_s20, %s2751_s20   ;;  %s2133_s19 = sphi %s2218_s19, %s2750_s19   ;;  %s2129_s18 = sphi %s2216_s18, %s2749_s18   ;;  %s2125_s17 = sphi %s2214_s17, %s2748_s17  }
  0x11   : > { %s1596_s22 = sadd.s32 4294967294, %s2137_s20   ;;  %p52_p0 = scmp.ne.s32.totalorder %s2129_s18, %s2125_s17 }
  0x12   : > { %p2704_p1 = scmp.eq.s32.totalorder %s2235_s21, 0  ;;  %p276_p3 = scmp.eq.s32.totalorder %s1596_s22, 1 }
  0x13   : > { %p1597_p5 = scmp.ge.s32.totalorder %s2137_s20, 1  ;;  %p309_p7 = scmp.lt.s32.totalorder %s2137_s20, 3 }
  0x14   : > { %p2244_p4 = por %p2704_p1, %p52_p0  ;;  %p2249_p6 = por %p276_p3, %p52_p0 }
  0x15   : > { %p2254_p8 = pnand %p1597_p5, %p309_p7  ;;  %s2139_s26 = smov [#allocation7]  }
  0x16   : > { %s2719_s23 = scalar_select %p2244_p4, 1, 0 }
  0x17   : > { %s2720_s24 = scalar_select %p2249_p6, 1, 0 }
  0x18   : > { %s2722_s25 = scalar_select %p2254_p8, 1, 0 }
  0x19   : > { %2721 = sst [smem:[#allocation18_spill]] %s2720_s24  ;;  %s321_s27 = sshll.u32 %s2139_s26, 4  ;;  %s2258_s27 = int_to_ptr.vmem [resolvable:$true] %s321_s27 }
  0x1a   : > { %p1803_p9 = pneg %p2254_p8  ;;  %s2140_s29 = smov [#allocation8]  }
  0x1b   : > { %s337_s30 = sshll.u32 %s2140_s29, 4  ;;  %s2141_s12 = smov [#allocation10]   ;;  %s2269_s30 = int_to_ptr.vmem [resolvable:$true] %s337_s30 }
  0x1c   : > { %p2265_p11 = pnand %p1803_p9, %p2704_p1  ;;  %s2271_s13 = sshll.u32 %s2141_s12, 4  ;;  %s360_s13 = int_to_ptr.vmem [resolvable:$true] %s2271_s13 }
  0x1d   : > { %s2724_s2 = sld [smem:[#allocation20_spill]] }
  0x1e   : > { %p2281_p13 = pneg %p2265_p11 }
  0x23   : > { %s1915_s16 = scalar_lea.hbm %s2724_s2, 256 }
  0x24   : > { %p1916_p12 = scmp.ne.s32.totalorder %s2724_s2, %s1915_s16  ;;  %p1922_p5 = scmp.lt.u32.totalorder %s1915_s16, %s2724_s2 }
  0x26   : > { %p1918_p0 = pnand %p2281_p13, %p1916_p12 }
  0x28   : > { %p1919_p3 = pneg %p1918_p0 }
  0x2a   : > { %p1924_p7 = pnand %p1922_p5, %p1919_p3 }
  0x2c   : > { %1927 = shalt.err (!%p1924_p7)
}
  0x2d   : > { %s1928_s14 = scalar_lea.vmem %s2258_s27, 256  ;;  %p1936_p2 = scmp.lt.s32.totalorder %s2258_s27, %s2258_s27 }
  0x2e   : > { %p1929_p9 = scmp.ne.s32.totalorder %s2258_s27, %s1928_s14  ;;  %p1937_p6 = scmp.lt.s32.totalorder %s1928_s14, %s1928_s14 }
  0x30   : > { %p1931_p10 = pnand %p1929_p9, %p2281_p13  ;;  %p1938_p12 = por %p1937_p6, %p1936_p2 }
  0x32   : > { %p1932_p1 = pneg %p1931_p10 }
  0x34   : > { %p1939_p0 = pnand %p1938_p12, %p1932_p1 }
  0x36   : > { %1942 = shalt.err (!%p1939_p0)
}
  0x37   : > { %s2709_s15 = smov 64   ;;  %s2143_s16 = smov 4  }
  0x38   : > { %1806 = dma.hbm_to_vmem [thread:$0]  (!%p2265_p11), %s2724_s2, 256, %s2258_s27, [#allocation6], %s2709_s15, %s2709_s15, %s2143_s16  }
  0x39   : > { %s2726_s4 = sld [smem:[#allocation21_spill]] }
  0x3f   : > { %s1943_s14 = scalar_lea.hbm %s2726_s4, 256 }
  0x40   : > { %p1944_p1 = scmp.ne.s32.totalorder %s2726_s4, %s1943_s14  ;;  %p1950_p10 = scmp.lt.u32.totalorder %s1943_s14, %s2726_s4 }
  0x42   : > { %p1946_p2 = pnand %p1944_p1, %p2281_p13 }
  0x44   : > { %p1947_p6 = pneg %p1946_p2 }
  0x46   : > { %p1952_p3 = pnand %p1950_p10, %p1947_p6 }
  0x48   : > { %1955 = shalt.err (!%p1952_p3)
}
  0x49   : > { %s1956_s27 = scalar_lea.vmem %s2269_s30, 256  ;;  %p1964_p12 = scmp.lt.s32.totalorder %s2269_s30, %s2269_s30 }
  0x4a   : > { %p1957_p5 = scmp.ne.s32.totalorder %s2269_s30, %s1956_s27  ;;  %p1965_p0 = scmp.lt.s32.totalorder %s1956_s27, %s1956_s27 }
  0x4c   : > { %p1959_p7 = pnand %p1957_p5, %p2281_p13  ;;  %p1966_p1 = por %p1965_p0, %p1964_p12 }
  0x4e   : > { %p1960_p9 = pneg %p1959_p7 }
  0x50   : > { %p1967_p2 = pnand %p1966_p1, %p1960_p9 }
  0x52   : > { %1970 = shalt.err (!%p1967_p2)
}
  0x53   : > { %1809 = dma.hbm_to_vmem [thread:$0]  (!%p2265_p11), %s2726_s4, 256, %s2269_s30, [#allocation9], %s2709_s15, %s2709_s15, %s2143_s16  }
  0x54   : > { %s2727_s8 = sld [smem:[#allocation22_spill]] }
  0x5a   : > { %s1971_s22 = scalar_lea.hbm %s2727_s8, 256 }
  0x5b   : > { %p1972_p6 = scmp.ne.s32.totalorder %s2727_s8, %s1971_s22  ;;  %p1978_p5 = scmp.lt.u32.totalorder %s1971_s22, %s2727_s8 }
  0x5d   : > { %p1974_p10 = pnand %p1972_p6, %p2281_p13 }
  0x5f   : > { %p1975_p3 = pneg %p1974_p10 }
  0x61   : > { %p1980_p7 = pnand %p1978_p5, %p1975_p3 }
  0x63   : > { %1983 = shalt.err (!%p1980_p7)
}
  0x64   : > { %s1984_s27 = scalar_lea.vmem %s360_s13, 256  ;;  %p1992_p1 = scmp.lt.s32.totalorder %s360_s13, %s360_s13 }
  0x65   : > { %p1985_p9 = scmp.ne.s32.totalorder %s360_s13, %s1984_s27  ;;  %p1993_p2 = scmp.lt.s32.totalorder %s1984_s27, %s1984_s27 }
  0x67   : > { %p1987_p12 = pnand %p1985_p9, %p2281_p13  ;;  %p1994_p4 = por %p1993_p2, %p1992_p1 }
  0x69   : > { %p1988_p0 = pneg %p1987_p12 }
  0x6b   : > { %p1995_p8 = pnand %p1994_p4, %p1988_p0 }
  0x6d   : > { %1998 = shalt.err (!%p1995_p8)
}
  0x6e   : > { %1812 = dma.hbm_to_vmem [thread:$0]  (!%p2265_p11), %s2727_s8, 256, %s360_s13, [#allocation9], %s2709_s15, %s2709_s15, %s2143_s16  }
  0x6f   : > { %s2354_s24 = sadd.s32 1, %s2137_s20   ;;  %s39_s10 = sadd.s32 1, %s2133_s19 }
  0x70   : > { %s36_s28 = ssub.s32 %s2137_s20, %s2354_s24  ;;  %p46_p8 = scmp.ne.s32.totalorder %s2133_s19, %s2129_s18 }
  0x71   : > { %p37_p4 = scmp.eq.s32.totalorder %s36_s28, 0  ;;  %p47_p13 = scmp.eq.s32.totalorder %s2137_s20, 0 }
  0x72   : > { %p1827_p6 = scmp.lt.s32.totalorder %s2137_s20, 2  ;;  %p2728_p3 = scmp.eq.s32.totalorder %s2235_s21, 1 }
  0x73   : > { %s2364_s11 = scalar_select %p37_p4, %s2133_s19, %s39_s10  }
  0x74   : > { %p48_p10 = por %p47_p13, %p46_p8  ;;  %p2368_p5 = por %p2728_p3, %p46_p8 }
  0x75   : > { %s2373_s22 = sand.u32 1, %s2133_s19   ;;  %s1653_s13 = sshll.u32 %s2137_s20, 7 }
  0x76   : > { %s2729_s17 = scalar_select %p2368_p5, 1, 0 }
  0x77   : > { %s1602_s26 = sshll.u32 %s2373_s22, 3  ;;  %s2730_s0 = sld [smem:[#allocation19_spill]] }
  0x78   : > { %s380_s27 = scalar_lea.vmem [#allocation2], %s1602_s26  ;;  %p2382_p11 = pnand %p1827_p6, %p48_p10 }
  0x79   : > { %s387_s30 = sshll.u32 %s380_s27, 4  ;;  %s377_s10 = scalar_lea.sflag [#allocation3], %s2373_s22  ;;  %s2386_s30 = int_to_ptr.vmem [resolvable:$true] %s387_s30 }
  0x7a   : > { %p2001_p9 = pneg %p2382_p11 }
  0x7d   : > { %s2380_s14 = scalar_lea.hbm %s2730_s0, %s1653_s13  ;;  %s2004_s29 = scalar_lea.hbm %s2730_s0, 256 }
  0x7e   : > { %s1999_s15 = scalar_lea.hbm %s2380_s14, 128  ;;  %p2005_p1 = scmp.lt.u32.totalorder %s2380_s14, %s2730_s0 }
  0x7f   : > { %p2000_p7 = scmp.ne.s32.totalorder %s2380_s14, %s1999_s15  ;;  %p2006_p2 = scmp.lt.u32.totalorder %s2004_s29, %s1999_s15 }
  0x80   : > { %p2008_p8 = scmp.lt.u32.totalorder %s1999_s15, %s2380_s14 }
  0x81   : > { %p2002_p12 = pnand %p2001_p9, %p2000_p7  ;;  %p2007_p4 = por %p2006_p2, %p2005_p1 }
  0x83   : > { %p2003_p0 = pneg %p2002_p12  ;;  %p2009_p13 = por %p2008_p8, %p2007_p4 }
  0x85   : > { %p2010_p6 = pnand %p2009_p13, %p2003_p0 }
  0x87   : > { %2013 = shalt.err (!%p2010_p6)
}
  0x88   : > { %s2014_s28 = scalar_lea.vmem %s2386_s30, 128  ;;  %s2144_s13 = smov [#allocation2]  }
  0x89   : > { %p2015_p10 = scmp.ne.s32.totalorder %s2386_s30, %s2014_s28  ;;  %s2019_s26 = sshll.u32 %s2144_s13, 4  ;;  %s2020_s26 = int_to_ptr.vmem [resolvable:$false] %s2019_s26 }
  0x8a   : > { %s2021_s12 = scalar_lea.vmem %s2020_s26, 256  ;;  %p2022_p12 = scmp.lt.s32.totalorder %s2386_s30, %s2020_s26 }
  0x8b   : > { %p2017_p3 = pnand %p2015_p10, %p2001_p9  ;;  %p2023_p1 = scmp.lt.s32.totalorder %s2021_s12, %s2014_s28 }
  0x8d   : > { %p2018_p7 = pneg %p2017_p3  ;;  %p2024_p2 = por %p2023_p1, %p2022_p12 }
  0x8f   : > { %p2025_p4 = pnand %p2024_p2, %p2018_p7 }
  0x91   : > { %2028 = shalt.err (!%p2025_p4)
}
  0x92   : > { %s2732_s15 = smov 64   ;;  %s1605_s29 = sshll.u32 %s2373_s22, 2 }
  0x93   : > { %1816 = dma.hbm_to_vmem [thread:$0]  (!%p2382_p11), %s2380_s14, 128, %s2386_s30, %s377_s10, %s2732_s15, %s2732_s15, %s2143_s16  }
  0x94   : > { %s1606_s27 = sshll.u32 %s2137_s20, 6  ;;  %s401_s12 = scalar_lea.vmem [#allocation5], %s1605_s29 }
  0x95   : > { %s2425_s26 = scalar_lea.hbm %s2692_s1, %s1606_s27  ;;  %s408_s0 = sshll.u32 %s401_s12, 4  ;;  %s409_s0 = int_to_ptr.vmem [resolvable:$true] %s408_s0 }
  0x96   : > { %s2733_s2 = sand.u32 1, %s2137_s20   ;;  %s2029_s8 = scalar_lea.hbm %s2425_s26, 64 }
  0x97   : > { %s398_s4 = scalar_lea.sflag [#allocation6], %s2733_s2  ;;  %p2030_p0 = scmp.ne.s32.totalorder %s2425_s26, %s2029_s8 }
  0x98   : > { %s2034_s14 = scalar_lea.hbm %s2692_s1, 128  ;;  %p2035_p6 = scmp.lt.u32.totalorder %s2425_s26, %s2692_s1 }
  0x99   : > { %p2032_p8 = pnand %p2030_p0, %p2001_p9  ;;  %p2036_p10 = scmp.lt.u32.totalorder %s2034_s14, %s2029_s8 }
  0x9a   : > { %p2038_p7 = scmp.lt.u32.totalorder %s2029_s8, %s2425_s26 }
  0x9b   : > { %p2033_p13 = pneg %p2032_p8  ;;  %p2037_p3 = por %p2036_p10, %p2035_p6 }
  0x9d   : > { %p2039_p12 = por %p2038_p7, %p2037_p3 }
  0x9f   : > { %p2040_p1 = pnand %p2039_p12, %p2033_p13 }
  0xa1   : > { %2043 = shalt.err (!%p2040_p1)
}
  0xa2   : > { %s2044_s2 = scalar_lea.vmem %s409_s0, 64  ;;  %s2145_s15 = smov [#allocation5]  }
  0xa3   : > { %p2045_p2 = scmp.ne.s32.totalorder %s409_s0, %s2044_s2  ;;  %s2049_s29 = sshll.u32 %s2145_s15, 4  ;;  %s2050_s29 = int_to_ptr.vmem [resolvable:$false] %s2049_s29 }
  0xa4   : > { %s2051_s27 = scalar_lea.vmem %s2050_s29, 128  ;;  %p2052_p8 = scmp.lt.s32.totalorder %s409_s0, %s2050_s29 }
  0xa5   : > { %p2047_p4 = pnand %p2045_p2, %p2001_p9  ;;  %p2053_p5 = scmp.lt.s32.totalorder %s2051_s27, %s2044_s2 }
  0xa7   : > { %p2048_p0 = pneg %p2047_p4  ;;  %p2054_p6 = por %p2053_p5, %p2052_p8 }
  0xa9   : > { %p2055_p10 = pnand %p2054_p6, %p2048_p0 }
  0xab   : > { %2058 = shalt.err (!%p2055_p10)
}
  0xac   : > { %1819 = dma.hbm_to_vmem [thread:$0]  (!%p2382_p11), %s2425_s26, 64, %s409_s0, %s398_s4  }
  0xad   : > { %p2734_p13 = scmp.ne.s32.totalorder %s2722_s25, 0 }
  0xae   : > { %s2451_s8 = sand.u32 (!%p2734_p13), 1, %s2129_s18   ;;  %p2735_p9 = scmp.ne.s32.totalorder (!%p2734_p13), %s2719_s23, 0 }
  0xaf   : > { %417 = sbr.rel (%p2734_p13) target bundleno = 2818 (0xb02), region = 60  ;;  %s1608_s28 = sshll.u32 (!%p2734_p13), %s2451_s8, 3 }
  0xb0   : > { %s420_s13 = scalar_lea.sflag (!%p2734_p13), [#allocation3], %s2451_s8  ;;  %s423_s12 = scalar_lea.vmem (!%p2734_p13), [#allocation2], %s1608_s28 }
  0xb6   : > { %2104 = dma.done.wait (%p2735_p9), %s420_s13, 128  }
  0xb7   : > { %2106 = vsyncadd (%p2735_p9), %s420_s13, 4294967168  ;;  %s428_s0 = sand.u32 1, %s2235_s21   ;;  %s1609_s4 = sshll.u32 %s2451_s8, 2 }
  0xb8   : > { %s429_s25 = scalar_lea.sflag [#allocation6], %s428_s0  ;;  %s432_s9 = scalar_lea.vmem [#allocation5], %s1609_s4 }
  0xb9   : > { %2108 = dma.done.wait (%p2735_p9), %s429_s25, 64  }
  0xba   : > { %2110 = vsyncadd (%p2735_p9), %s429_s25, 4294967232  ;;  %p2736_p5 = scmp.eq.s32.totalorder %s2235_s21, 0 }
  0xbc   : > { %2112 = dma.done.wait (%p2736_p5), [#allocation6], 256   ;;  %p2737_p11 = pmov %p2736_p5 }
  0xbd   : > { %p2738_p3 = pmov %p2736_p5 }
  0xbe   : > { %2114 = vsyncadd (%p2737_p11), [#allocation6], 4294967040 }
  0xbf   : > { %2116 = dma.done.wait (%p2738_p3), [#allocation9], 512   ;;  %p2739_p7 = pmov %p2738_p3 }
  0xc0   : > { %v2146_v0 = vmov 0.0   ;;  %vm2147_vm0 = vmmov 0   ;;  %v1876_v1 = vld [vmem:[#allocation8] sm:$0xff]   ;;  %v1877_v2 = vld [vmem:[#allocation7] sm:$0xff]   ;;  %v1878_v3 = vld [vmem:[#allocation8 + $0x8] sm:$0xff]   ;;  %vm532_vm1 = vcmask 261120  }
  0xc1   : > { %2118 = vsyncadd (%p2739_p7), [#allocation9], 4294966784  ;;  %1697 = vmatprep.subr.bf16.mxu1 %v2146_v0  ;;  %1689 = vmatprep.subr.bf16.mxu0 %v2146_v0  ;;  %v1879_v4 = vld [vmem:[#allocation7 + $0x8] sm:$0xff]   ;;  %v503_v5 = vld [vmem:[%s432_s9] sm:$0xf]  ;;  %vm709_vm2 = vcmask 64512  }
  0xc2   : > { %1701 = vmatprep.mubr.msk.bf16.mxu1 %vm2147_vm0, %v2146_v0  ;;  %1693 = vmatprep.mubr.msk.bf16.mxu0 %vm2147_vm0, %v2146_v0  ;;  %v1880_v6 = vld [vmem:[%s423_s12] sm:$0xff]   ;;  %s2148_s14 = smov 120   ;;  %s2149_s29 = smov 112   ;;  %vm785_vm3 = vcmask 1043456  }
  0xc3   : > { %1698 = vmatpush3.bf16.msra.mxu1 %v1876_v1  ;;  %1690 = vmatpush3.bf16.msra.mxu0 %v1877_v2  ;;  %v1621_v7 = vld [vmem:[%s2696_s5] ss:$0 sm:$0xff]  ;;  %v1882_v24 = vld [vmem:[%s2697_s6 + $0x8] sm:$0xff]   ;;  %p495_p12 = scmp.lt.s32.totalorder %s2235_s21, 1  ;;  %s2740_s25 = sld [smem:[#allocation25_spill]] }
  0xc4   : > { %1699 = vmatprep.subr.bf16.mxu1 %v2146_v0  ;;  %1691 = vmatprep.subr.bf16.mxu0 %v2146_v0  ;;  %v1616_v8 = vld [vmem:[%s2694_s3] ss:$0 sm:$0xff]  ;;  %s2150_s23 = smov 104   ;;  %s1613_s26 = sshll.u32 %s2451_s8, 4 }
  0xc5   : > { %v1881_v23 = vld [vmem:[%s2697_s6] sm:$0xff]   ;;  %s496_s13 = scalar_select %p495_p12, %s2235_s21, 1 }
  0xc6   : > { %v1625_v54 = vld [vmem:[%s2698_s7] ss:$0 sm:$0xff]  ;;  %s1655_s30 = sshll.u32 %s2235_s21, 8  ;;  %s485_s10 = scalar_lea.vmem [#allocation11], %s1613_s26 }
  0xc7   : > { %1700 = vmatpush3.bf16.msra.mxu1 %v1878_v3  ;;  %1692 = vmatpush3.bf16.msra.mxu0 %v1879_v4  ;;  %s1654_s12 = sshll.u32 %s496_s13, 6  ;;  %s1444_s2 = sshll.u32 %s485_s10, 4  ;;  %s2645_s2 = int_to_ptr.vmem [resolvable:$true] %s1444_s2 }
  0xc8   : > { %1713 = vmatprep.subr.bf16.mxu1 %v2146_v0  ;;  %1705 = vmatprep.subr.bf16.mxu0 %v2146_v0  ;;  %s2742_s27 = sld [smem:[#allocation24_spill]]  ;;  %s1426_s21 = scalar_lea.sflag [#allocation4], %s2451_s8 }
  0xc9   : > { %s2553_s9 = scalar_lea.vmem %s2740_s25, %s1654_s12  ;;  %s2059_s13 = scalar_lea.vmem %s2645_s2, 256 }
  0xca   : > { %1702 = vmatmul.mubr.msk.bf16.vlgmr.msra.gmra.mrb[0].mxu1 %vm532_vm1, %v503_v5  ;;  %1694 = vmatmul.mubr.msk.bf16.vlgmr.msra.gmra.mrb[0].mxu0 %vm532_vm1, %v1880_v6  ;;  %p2060_p1 = scmp.ne.s32.totalorder %s2645_s2, %s2059_s13  ;;  %p2743_p2 = scmp.ne.s32.totalorder %s2729_s17, 0 }
  0xcb   : > { %1715 = vmatprep.mubr.msk.bf16.mxu1 %vm2147_vm0, %v2146_v0  ;;  %1709 = vmatprep.mubr.msk.bf16.mxu0 %vm2147_vm0, %v2146_v0  ;;  %s2151_s12 = smov [#allocation11]  }
  0xcc   : > { %1706 = vmatpush3.bf16.msra.mxu0 %v1881_v23  ;;  %v831_v23 = vld [vmem:[#allocation10] sm:$0xf]  ;;  %p2061_p4 = pnand %p2060_p1, %p2743_p2  ;;  %s2063_s0 = sshll.u32 %s2151_s12, 4  ;;  %s2064_s0 = int_to_ptr.vmem [resolvable:$false] %s2063_s0 }
  0xcd   : > { %1707 = vmatprep.subr.bf16.mxu0 %v2146_v0  ;;  %s2065_s4 = scalar_lea.vmem %s2064_s0, 512  ;;  %p2066_p8 = scmp.lt.s32.totalorder %s2645_s2, %s2064_s0 }
  0xce   : > { %s2643_s28 = scalar_lea.hbm %s2742_s27, %s1655_s30  ;;  %p2062_p0 = pneg %p2061_p4 }
  0xcf   : > { %p2067_p6 = scmp.lt.s32.totalorder %s2065_s4, %s2059_s13 }
  0xd0   : > { %1708 = vmatpush3.bf16.msra.mxu0 %v1882_v24 }
  0xd1   : > { %1719 = vmatprep.subr.bf16.mxu0 %v2146_v0  ;;  %p2068_p10 = por %p2067_p6, %p2066_p8 }
  0xd3   : > { %1710 = vmatmul.mubr.msk.bf16.vlgmr.msra.gmra.mrb[4].mxu0 %vm532_vm1, %v503_v5  ;;  %p2069_p13 = pnand %p2068_p10, %p2062_p0 }
  0xd4   : > { %1721 = vmatprep.mubr.msk.bf16.mxu0 %vm2147_vm0, %v2146_v0 }
 0x19d   : > { %v637_v9 = vpop.f32.mrb[0].mxu1  ;;  %v570_v12 = vpop.f32.mrb[0].mxu0 }
 0x19e   : > { %v638_v10 = vadd.f32 %v1621_v7, %v637_v9  ;;  %v1703_v11 = vpop.f32.mrb[1].mxu1  ;;  %v571_v14 = vadd.f32 %v1616_v8, %v570_v12  ;;  %v1695_v15 = vpop.f32.mrb[1].mxu0  ;;  %v963_v12 = vld [vmem:[#allocation10 + $0x4] sm:$0xf] }
 0x19f   : > { %v640_v13 = vpop.f32.mrb[2].mxu1  ;;  %v573_v18 = vpop.f32.mrb[2].mxu0 }
 0x1a0   : > { %v2495_v16 = vpack.c.bf16 %v638_v10, %v638_v10  ;;  %v1704_v17 = vpop.f32.mrb[3].mxu1  ;;  %v574_v19 = vadd.f32 %v1616_v8, %v573_v18  ;;  %v1696_v20 = vpop.f32.mrb[3].mxu0  ;;  %v968_v13 = vsel %vm785_vm3, %v963_v12, 0 }
 0x1a2   : > { %836 = vrot.lane.b32.xlu0 %v2495_v16, %s2148_s14  ;;  %v714_v21 = vsel %vm709_vm2, %v2495_v16, 0  ;;  %v2501_v22 = vpack.c.bf16 %v574_v19, %v571_v14 }
 0x1a3   : > { %1714 = vmatpush3.bf16.xpose.msra.mxu1 %v714_v21 }
 0x1a4   : > { %1725 = vmatprep.subr.bf16.mxu1 %v2146_v0 }
 0x1a6   : > { %833 = vrot.lane.b32.xlu0 %v2501_v22, %s2148_s14  ;;  %v700_v46 = vpop.f32.mrb[4].mxu0 }
 0x1a7   : > { %v1711_v47 = vpop.f32.mrb[5].mxu0  ;;  %v701_v55 = vadd.f32 %v1625_v54, %v700_v46 }
 0x1a8   : > { %v703_v48 = vpop.f32.mrb[6].mxu0 }
 0x1a9   : > { %v1712_v49 = vpop.f32.mrb[7].mxu0  ;;  %v2537_v56 = vpack.c.bf16 %v701_v55, %v701_v55 }
 0x1aa   : > { %1716 = vmatmul.mubr.msk.bf16.vlgmr.msra.gmra.mrb[4].mxu1 %vm709_vm2, %v2501_v22 }
 0x1ab   : > { %1727 = vmatprep.mubr.msk.bf16.mxu1 %vm2147_vm0, %v2146_v0  ;;  %v787_v57 = vsel %vm785_vm3, %v2537_v56, 0 }
 0x1ac   : > { %1720 = vmatpush3.bf16.msra.mxu0 %v787_v57 }
 0x1ad   : > { %1731 = vmatprep.subr.bf16.mxu0 %v2146_v0 }
 0x214   : > { %v837_v25 = vpop.permute.xlu0 %836 }
 0x215   : > { %v842_v26 = vsel %vm709_vm2, %v837_v25, 0 }
 0x216   : > { %1726 = vmatpush3.bf16.xpose.msra.mxu1 %v842_v26  ;;  %v1015_v26 = vsel %vm785_vm3, %v831_v23, 0 }
 0x217   : > { %1737 = vmatprep.subr.bf16.mxu1 %v2146_v0 }
 0x218   : > { %v834_v27 = vpop.permute.xlu0 %833 }
 0x21d   : > { %1728 = vmatmul.mubr.msk.bf16.vlgmr.msra.gmra.mrb[8].mxu1 %vm709_vm2, %v834_v27 }
 0x21e   : > { %1739 = vmatprep.mubr.msk.bf16.mxu1 %vm2147_vm0, %v2146_v0  ;;  %1738 = vmatpush3.bf16.msra.mxu1 %v968_v13 }
 0x21f   : > { %1749 = vmatprep.subr.bf16.mxu1 %v2146_v0 }
 0x27d   : > { %v750_v28 = vpop.f32.mrb[4].mxu1 }
 0x27e   : > { %v1717_v29 = vpop.f32.mrb[5].mxu1  ;;  %v757_v30 = vsel %vm709_vm2, %v750_v28, -inf }
 0x27f   : > { %758 = vmax.xlane.f32.xlu1 %v757_v30  ;;  %v753_v31 = vpop.f32.mrb[6].mxu1 }
 0x280   : > { %v1718_v32 = vpop.f32.mrb[7].mxu1  ;;  %v760_v33 = vsel %vm709_vm2, %v753_v31, -inf }
 0x283   : > { %761 = vmax.xlane.f32.xlu1 %v760_v33 }
 0x2f0   : > { %v878_v34 = vpop.f32.mrb[8].mxu1 }
 0x2f1   : > { %v1729_v35 = vpop.f32.mrb[9].mxu1  ;;  %v885_v36 = vsel %vm709_vm2, %v878_v34, -inf }
 0x2f2   : > { %886 = vmax.xlane.f32.xlu0 %v885_v36  ;;  %v881_v37 = vpop.f32.mrb[10].mxu1 }
 0x2f3   : > { %v1730_v38 = vpop.f32.mrb[11].mxu1  ;;  %v888_v39 = vsel %vm709_vm2, %v881_v37, -inf }
 0x2f4   : > { %889 = vmax.xlane.f32.xlu1 %v888_v39 }
 0x308   : > { %1060 = vrot.lane.b32.xlu0 %v2495_v16, %s2149_s29 }
 0x30c   : > { %v759_v40 = vpop.xlane.xlu1 %758 }
 0x30d   : > { %v763_v41 = vsub.f32 %v750_v28, %v759_v40 }
 0x30f   : > { %v765_v42 = vmul.f32 1.442695, %v763_v41 }
 0x310   : > { %v762_v43 = vpop.xlane.xlu1 %761 }
 0x311   : > { %1883 = vpow2.f32 %v765_v42  ;;  %v764_v44 = vsub.f32 %v753_v31, %v762_v43 }
 0x313   : > { %v767_v45 = vmul.f32 1.442695, %v764_v44 }
 0x315   : > { %1885 = vpow2.f32 %v767_v45 }
 0x31b   : > { %v1884_v50 = vpop.eup %1883 }
 0x31c   : > { %v769_v51 = vsel %vm709_vm2, %v1884_v50, 0.0 }
 0x31d   : > { %770 = vadd.xlane.f32.xlu1 %v769_v51 }
 0x31f   : > { %v1886_v52 = vpop.eup %1885 }
 0x320   : > { %v772_v53 = vsel %vm709_vm2, %v1886_v52, 0.0 }
 0x321   : > { %773 = vadd.xlane.f32.xlu1 %v772_v53 }
 0x37f   : > { %v887_v58 = vpop.xlane.xlu0 %886 }
 0x380   : > { %v891_v59 = vsub.f32 %v878_v34, %v887_v58 }
 0x381   : > { %v890_v60 = vpop.xlane.xlu1 %889 }
 0x382   : > { %v893_v61 = vmul.f32 1.442695, %v891_v59  ;;  %v892_v62 = vsub.f32 %v881_v37, %v890_v60 }
 0x383   : > { %v1061_v34 = vpop.permute.xlu0 %1060 }
 0x384   : > { %1887 = vpow2.f32 %v893_v61  ;;  %v895_v63 = vmul.f32 1.442695, %v892_v62  ;;  %v1066_v38 = vsel %vm709_vm2, %v1061_v34, 0 }
 0x386   : > { %1889 = vpow2.f32 %v895_v63 }
 0x38e   : > { %v1888_v1 = vpop.eup %1887 }
 0x38f   : > { %v897_v2 = vsel %vm709_vm2, %v1888_v1, 0.0 }
 0x390   : > { %v1890_v3 = vpop.eup %1889  ;;  %898 = vadd.xlane.f32.xlu1 %v897_v2 }
 0x391   : > { %v900_v4 = vsel %vm709_vm2, %v1890_v3, 0.0 }
 0x394   : > { %901 = vadd.xlane.f32.xlu1 %v900_v4 }
 0x3a5   : > { %912 = vrot.lane.b32.xlu1 %v2537_v56, %s2148_s14  ;;  %s2741_s14 = sld [smem:[#allocation23_spill]] }
 0x3a9   : > { %1058 = vrot.lane.b32.xlu1 %v2501_v22, %s2149_s29 }
 0x3aa   : > { %v771_v5 = vpop.xlane.xlu1 %770 }
 0x3ab   : > { %1891 = vrcp.f32 %v771_v5 }
 0x3ae   : > { %v774_v6 = vpop.xlane.xlu1 %773 }
 0x3af   : > { %1893 = vrcp.f32 %v774_v6 }
 0x3b5   : > { %v1892_v7 = vpop.eup %1891 }
 0x3b6   : > { %v776_v8 = vmul.f32 %v1892_v7, %v1884_v50 }
 0x3b8   : > { %779 = vst.msk [vmem:[%s2553_s9] sm:$0xff] %vm709_vm2, %v776_v8 }
 0x3b9   : > { %v1894_v9 = vpop.eup %1893 }
 0x3ba   : > { %v778_v10 = vmul.f32 %v1894_v9, %v1886_v52 }
 0x3bc   : > { %780 = vst.msk [vmem:[%s2553_s9 + $0x8] sm:$0xff] %vm709_vm2, %v778_v10  ;;  %v781_v11 = vpack.c.bf16 %v778_v10, %v776_v8 }
 0x3be   : > { %1722 = vmatmul.mubr.msk.bf16.vlgmr.msra.gmra.mrb[8].mxu0 %vm709_vm2, %v781_v11 }
 0x3bf   : > { %1733 = vmatprep.mubr.msk.bf16.mxu0 %vm2147_vm0, %v2146_v0 }
 0x41d   : > { %v899_v14 = vpop.xlane.xlu1 %898 }
 0x41e   : > { %1895 = vrcp.f32 %v899_v14 }
 0x421   : > { %v902_v15 = vpop.xlane.xlu1 %901 }
 0x422   : > { %1897 = vrcp.f32 %v902_v15 }
 0x425   : > { %v913_v17 = vpop.permute.xlu1 %912 }
 0x426   : > { %v918_v18 = vsel %vm785_vm3, %v913_v17, 0 }
 0x427   : > { %1732 = vmatpush3.bf16.msra.mxu0 %v918_v18 }
 0x428   : > { %v1896_v19 = vpop.eup %1895  ;;  %1743 = vmatprep.subr.bf16.mxu0 %v2146_v0 }
 0x429   : > { %v904_v20 = vmul.f32 %v1896_v19, %v1888_v1  ;;  %v1059_v39 = vpop.permute.xlu1 %1058 }
 0x42b   : > { %1632 = vst.msk [vmem:[%s2553_s9 + $0x10] sm:$0xff] %vm709_vm2, %v904_v20 }
 0x42c   : > { %v1898_v21 = vpop.eup %1897 }
 0x42d   : > { %v906_v24 = vmul.f32 %v1898_v21, %v1890_v3 }
 0x42f   : > { %1633 = vst.msk [vmem:[%s2553_s9 + $0x18] sm:$0xff] %vm709_vm2, %v906_v24  ;;  %v910_v25 = vpack.c.bf16 %v906_v24, %v904_v20 }
 0x431   : > { %1734 = vmatmul.mubr.msk.bf16.vlgmr.msra.gmra.mrb[12].mxu0 %vm709_vm2, %v910_v25 }
 0x432   : > { %1744 = vmatpush3.bf16.msra.mxu0 %v1015_v26  ;;  %1745 = vmatprep.mubr.msk.bf16.mxu0 %vm2147_vm0, %v2146_v0 }
 0x433   : > { %1755 = vmatprep.subr.bf16.mxu0 %v2146_v0 }
 0x491   : > { %v823_v27 = vpop.f32.mrb[8].mxu0 }
 0x492   : > { %v1723_v28 = vpop.f32.mrb[9].mxu0 }
 0x493   : > { %v826_v29 = vpop.f32.mrb[10].mxu0 }
 0x494   : > { %v830_v30 = vpack.c.bf16 %v826_v29, %v823_v27  ;;  %v1724_v31 = vpop.f32.mrb[11].mxu0 }
 0x496   : > { %1746 = vmatmul.mubr.msk.bf16.vlgmr.msra.gmra.mrb[16].mxu0 %vm709_vm2, %v830_v30 }
 0x497   : > { %1757 = vmatprep.mubr.msk.bf16.mxu0 %vm2147_vm0, %v2146_v0 }
 0x504   : > { %v954_v32 = vpop.f32.mrb[12].mxu0 }
 0x505   : > { %v1735_v33 = vpop.f32.mrb[13].mxu0 }
 0x506   : > { %v957_v35 = vpop.f32.mrb[14].mxu0 }
 0x507   : > { %v961_v36 = vpack.c.bf16 %v957_v35, %v954_v32  ;;  %v1736_v37 = vpop.f32.mrb[15].mxu0 }
 0x509   : > { %1740 = vmatmul.mubr.msk.bf16.vlgmr.msra.gmra.mrb[12].mxu1 %vm709_vm2, %v961_v36 }
 0x50a   : > { %1750 = vmatpush3.bf16.xpose.msra.mxu1 %v1066_v38  ;;  %1751 = vmatprep.mubr.msk.bf16.mxu1 %vm2147_vm0, %v2146_v0 }
 0x50b   : > { %1761 = vmatprep.subr.bf16.mxu1 %v2146_v0 }
 0x511   : > { %1752 = vmatmul.mubr.msk.bf16.vlgmr.msra.gmra.mrb[16].mxu1 %vm709_vm2, %v1059_v39 }
 0x512   : > { %1763 = vmatprep.mubr.msk.bf16.mxu1 %vm2147_vm0, %v2146_v0 }
 0x569   : > { %v1051_v40 = vpop.f32.mrb[16].mxu0 }
 0x56a   : > { %v1747_v41 = vpop.f32.mrb[17].mxu0 }
 0x56b   : > { %v1054_v42 = vpop.f32.mrb[18].mxu0 }
 0x56c   : > { %v1748_v43 = vpop.f32.mrb[19].mxu0 }
 0x5dc   : > { %v1004_v44 = vpop.f32.mrb[12].mxu1 }
 0x5dd   : > { %v2586_v45 = vadd.f32 %v1051_v40, %v1004_v44  ;;  %v1741_v46 = vpop.f32.mrb[13].mxu1 }
 0x5de   : > { %v1007_v47 = vpop.f32.mrb[14].mxu1 }
 0x5df   : > { %v2588_v48 = vadd.f32 %v1054_v42, %v1007_v47  ;;  %v1742_v49 = vpop.f32.mrb[15].mxu1 }
 0x5e4   : > { %v1102_v50 = vpop.f32.mrb[16].mxu1 }
 0x5e5   : > { %v1753_v51 = vpop.f32.mrb[17].mxu1  ;;  %v1109_v52 = vsel %vm709_vm2, %v1102_v50, -inf }
 0x5e6   : > { %1110 = vmax.xlane.f32.xlu1 %v1109_v52  ;;  %v1105_v53 = vpop.f32.mrb[18].mxu1 }
 0x5e7   : > { %v1754_v54 = vpop.f32.mrb[19].mxu1  ;;  %v1112_v55 = vsel %vm709_vm2, %v1105_v53, -inf }
 0x5e8   : > { %1113 = vmax.xlane.f32.xlu0 %v1112_v55 }
 0x5fe   : > { %1135 = vrot.lane.b32.xlu0 %v2537_v56, %s2149_s29 }
 0x673   : > { %v1111_v57 = vpop.xlane.xlu1 %1110 }
 0x674   : > { %v1115_v58 = vsub.f32 %v1102_v50, %v1111_v57 }
 0x675   : > { %v1114_v59 = vpop.xlane.xlu0 %1113 }
 0x676   : > { %v1117_v60 = vmul.f32 1.442695, %v1115_v58  ;;  %v1116_v61 = vsub.f32 %v1105_v53, %v1114_v59 }
 0x678   : > { %1899 = vpow2.f32 %v1117_v60  ;;  %v1119_v62 = vmul.f32 1.442695, %v1116_v61  ;;  %v1647_v61 = vld [vmem:[%s2741_s14] ss:$0 sm:$0xff] }
 0x679   : > { %v1136_v63 = vpop.permute.xlu0 %1135 }
 0x67a   : > { %1901 = vpow2.f32 %v1119_v62  ;;  %v1141_v1 = vsel %vm785_vm3, %v1136_v63, 0 }
 0x67b   : > { %1756 = vmatpush3.bf16.msra.mxu0 %v1141_v1 }
 0x67c   : > { %1767 = vmatprep.subr.bf16.mxu0 %v2146_v0 }
 0x682   : > { %v1900_v2 = vpop.eup %1899 }
 0x683   : > { %v1121_v3 = vsel %vm709_vm2, %v1900_v2, 0.0 }
 0x684   : > { %v1902_v4 = vpop.eup %1901  ;;  %1122 = vadd.xlane.f32.xlu1 %v1121_v3 }
 0x685   : > { %v1124_v5 = vsel %vm709_vm2, %v1902_v4, 0.0 }
 0x688   : > { %1125 = vadd.xlane.f32.xlu1 %v1124_v5 }
 0x699   : > { %1238 = vrot.lane.b32.xlu1 %v2495_v16, %s2150_s23 }
 0x69d   : > { %1236 = vrot.lane.b32.xlu1 %v2501_v22, %s2150_s23  ;;  %v1186_v22 = vld [vmem:[#allocation10 + $0x8] sm:$0xf] }
 0x69e   : > { %v1191_v15 = vsel %vm785_vm3, %v1186_v22, 0 }
 0x69f   : > { %1762 = vmatpush3.bf16.msra.mxu1 %v1191_v15 }
 0x6a0   : > { %1773 = vmatprep.subr.bf16.mxu1 %v2146_v0 }
 0x711   : > { %v1123_v6 = vpop.xlane.xlu1 %1122 }
 0x712   : > { %1903 = vrcp.f32 %v1123_v6 }
 0x715   : > { %v1126_v7 = vpop.xlane.xlu1 %1125 }
 0x716   : > { %1905 = vrcp.f32 %v1126_v7 }
 0x719   : > { %v1239_v12 = vpop.permute.xlu1 %1238 }
 0x71a   : > { %v1244_v14 = vsel %vm709_vm2, %v1239_v12, 0 }
 0x71c   : > { %v1904_v8 = vpop.eup %1903 }
 0x71d   : > { %v1128_v9 = vmul.f32 %v1904_v8, %v1900_v2  ;;  %v1237_v16 = vpop.permute.xlu1 %1236 }
 0x71f   : > { %1638 = vst.msk [vmem:[%s2553_s9 + $0x20] sm:$0xff] %vm709_vm2, %v1128_v9 }
 0x720   : > { %v1906_v10 = vpop.eup %1905 }
 0x721   : > { %v1130_v11 = vmul.f32 %v1906_v10, %v1902_v4 }
 0x723   : > { %1639 = vst.msk [vmem:[%s2553_s9 + $0x28] sm:$0xff] %vm709_vm2, %v1130_v11  ;;  %v1134_v13 = vpack.c.bf16 %v1130_v11, %v1128_v9 }
 0x725   : > { %1758 = vmatmul.mubr.msk.bf16.vlgmr.msra.gmra.mrb[20].mxu0 %vm709_vm2, %v1134_v13 }
 0x726   : > { %1768 = vmatpush3.bf16.xpose.msra.mxu0 %v1244_v14  ;;  %1769 = vmatprep.mubr.msk.bf16.mxu0 %vm2147_vm0, %v2146_v0 }
 0x727   : > { %1779 = vmatprep.subr.bf16.mxu0 %v2146_v0 }
 0x72d   : > { %1770 = vmatmul.mubr.msk.bf16.vlgmr.msra.gmra.mrb[24].mxu0 %vm709_vm2, %v1237_v16 }
 0x72e   : > { %1781 = vmatprep.mubr.msk.bf16.mxu0 %vm2147_vm0, %v2146_v0 }
 0x7f8   : > { %v1177_v17 = vpop.f32.mrb[20].mxu0 }
 0x7f9   : > { %v1759_v18 = vpop.f32.mrb[21].mxu0 }
 0x7fa   : > { %v1180_v19 = vpop.f32.mrb[22].mxu0 }
 0x7fb   : > { %v1184_v20 = vpack.c.bf16 %v1180_v19, %v1177_v17  ;;  %v1760_v21 = vpop.f32.mrb[23].mxu0 }
 0x7fd   : > { %1764 = vmatmul.mubr.msk.bf16.vlgmr.msra.gmra.mrb[20].mxu1 %vm709_vm2, %v1184_v20 }
 0x7fe   : > { %1775 = vmatprep.mubr.msk.bf16.mxu1 %vm2147_vm0, %v2146_v0 }
 0x800   : > { %v1280_v23 = vpop.f32.mrb[24].mxu0 }
 0x801   : > { %v1771_v24 = vpop.f32.mrb[25].mxu0  ;;  %v1287_v25 = vsel %vm709_vm2, %v1280_v23, -inf }
 0x802   : > { %1288 = vmax.xlane.f32.xlu0 %v1287_v25  ;;  %v1283_v26 = vpop.f32.mrb[26].mxu0 }
 0x803   : > { %v1772_v27 = vpop.f32.mrb[27].mxu0  ;;  %v1290_v28 = vsel %vm709_vm2, %v1283_v26, -inf }
 0x804   : > { %1291 = vmax.xlane.f32.xlu1 %v1290_v28 }
 0x815   : > { %1313 = vrot.lane.b32.xlu1 %v2537_v56, %s2150_s23  ;;  %v1364_v56 = vld [vmem:[#allocation10 + $0xc] sm:$0xf] }
 0x816   : > { %v1369_v40 = vsel %vm785_vm3, %v1364_v56, 0 }
 0x817   : > { %1780 = vmatpush3.bf16.msra.mxu0 %v1369_v40 }
 0x88f   : > { %v1289_v29 = vpop.xlane.xlu0 %1288 }
 0x890   : > { %v1293_v30 = vsub.f32 %v1280_v23, %v1289_v29 }
 0x891   : > { %v1292_v31 = vpop.xlane.xlu1 %1291 }
 0x892   : > { %v1295_v32 = vmul.f32 1.442695, %v1293_v30  ;;  %v1294_v33 = vsub.f32 %v1283_v26, %v1292_v31 }
 0x894   : > { %1907 = vpow2.f32 %v1295_v32  ;;  %v1297_v0 = vmul.f32 1.442695, %v1294_v33 }
 0x895   : > { %v1314_v34 = vpop.permute.xlu1 %1313 }
 0x896   : > { %1909 = vpow2.f32 %v1297_v0  ;;  %v1319_v35 = vsel %vm785_vm3, %v1314_v34, 0 }
 0x897   : > { %1774 = vmatpush3.bf16.msra.mxu1 %v1319_v35 }
 0x89e   : > { %v1908_v36 = vpop.eup %1907 }
 0x89f   : > { %v1299_v37 = vsel %vm709_vm2, %v1908_v36, 0.0 }
 0x8a0   : > { %v1910_v38 = vpop.eup %1909  ;;  %1300 = vadd.xlane.f32.xlu0 %v1299_v37 }
 0x8a1   : > { %v1302_v39 = vsel %vm709_vm2, %v1910_v38, 0.0 }
 0x8a4   : > { %1303 = vadd.xlane.f32.xlu0 %v1302_v39 }
 0x8d0   : > { %v1227_v41 = vpop.f32.mrb[20].mxu1 }
 0x8d1   : > { %v1234_v42 = vadd.f32 %v1227_v41, %v2586_v45  ;;  %v1765_v43 = vpop.f32.mrb[21].mxu1 }
 0x8d2   : > { %v1230_v44 = vpop.f32.mrb[22].mxu1 }
 0x8d3   : > { %v1235_v46 = vadd.f32 %v1230_v44, %v2588_v48  ;;  %v1766_v47 = vpop.f32.mrb[23].mxu1 }
 0x92d   : > { %v1301_v49 = vpop.xlane.xlu0 %1300 }
 0x92e   : > { %1911 = vrcp.f32 %v1301_v49 }
 0x931   : > { %v1304_v50 = vpop.xlane.xlu0 %1303 }
 0x932   : > { %1913 = vrcp.f32 %v1304_v50 }
 0x938   : > { %v1912_v51 = vpop.eup %1911 }
 0x939   : > { %v1306_v52 = vmul.f32 %v1912_v51, %v1908_v36 }
 0x93b   : > { %1643 = vst.msk [vmem:[%s2553_s9 + $0x30] sm:$0xff] %vm709_vm2, %v1306_v52 }
 0x93c   : > { %v1914_v53 = vpop.eup %1913 }
 0x93d   : > { %v1308_v54 = vmul.f32 %v1914_v53, %v1910_v38 }
 0x93f   : > { %1644 = vst.msk [vmem:[%s2553_s9 + $0x38] sm:$0xff] %vm709_vm2, %v1308_v54  ;;  %v1312_v45 = vpack.c.bf16 %v1308_v54, %v1306_v52 }
 0x941   : > { %1776 = vmatmul.mubr.msk.bf16.vlgmr.msra.gmra.mrb[24].mxu1 %vm709_vm2, %v1312_v45 }
 0xa14   : > { %v1355_v55 = vpop.f32.mrb[24].mxu1 }
 0xa15   : > { %v1777_v48 = vpop.f32.mrb[25].mxu1 }
 0xa16   : > { %v1358_v57 = vpop.f32.mrb[26].mxu1 }
 0xa17   : > { %v1362_v58 = vpack.c.bf16 %v1358_v57, %v1355_v55  ;;  %v1778_v59 = vpop.f32.mrb[27].mxu1 }
 0xa19   : > { %1782 = vmatmul.mubr.msk.bf16.vlgmr.msra.gmra.mrb[28].mxu0 %vm709_vm2, %v1362_v58 }
 0xaec   : > { %v1405_v60 = vpop.f32.mrb[28].mxu0 }
 0xaed   : > { %v1412_v62 = vadd.f32 %v1405_v60, %v1234_v42  ;;  %v1783_v63 = vpop.f32.mrb[29].mxu0 }
 0xaee   : > { %v1408_v1 = vpop.f32.mrb[30].mxu0 }
 0xaef   : > { %v1421_v2 = vadd.f32 %v1647_v61, %v1412_v62  ;;  %v1413_v3 = vadd.f32 %v1408_v1, %v1235_v46  ;;  %v1784_v4 = vpop.f32.mrb[31].mxu0 }
 0xaf1   : > { %1423 = vst.msk [vmem:[%s485_s10] sm:$0xff] %vm532_vm1, %v1421_v2  ;;  %v1422_v5 = vadd.f32 %v1647_v61, %v1413_v3 }
 0xaf3   : > { %1424 = vst.msk [vmem:[%s485_s10 + $0x8] sm:$0xff] %vm532_vm1, %v1422_v5 }
 0xaf4   : > { %2072 = shalt.err (!%p2069_p13)
}
 0xaf5   : > { %s2073_s25 = scalar_lea.hbm %s2643_s28, 256  ;;  %s2077_s26 = scalar_lea.hbm %s2742_s27, 512 }
 0xaf6   : > { %p2074_p9 = scmp.ne.s32.totalorder %s2643_s28, %s2073_s25  ;;  %p2078_p3 = scmp.lt.u32.totalorder %s2643_s28, %s2742_s27 }
 0xaf7   : > { %p2079_p7 = scmp.lt.u32.totalorder %s2077_s26, %s2073_s25  ;;  %p2081_p1 = scmp.lt.u32.totalorder %s2073_s25, %s2643_s28 }
 0xaf8   : > { %p2075_p5 = pnand %p2074_p9, %p2743_p2 }
 0xaf9   : > { %p2080_p12 = por %p2079_p7, %p2078_p3 }
 0xafa   : > { %p2076_p11 = pneg %p2075_p5 }
 0xafb   : > { %p2082_p4 = por %p2081_p1, %p2080_p12 }
 0xafd   : > { %p2083_p0 = pnand %p2082_p4, %p2076_p11 }
 0xaff   : > { %2086 = shalt.err (!%p2083_p0)
}
 0xb00   : > { %s2152_s14 = smov 128   ;;  %s2153_s30 = smov 8  }
 0xb01   : > { %1801 = dma.vmem_to_hbm [thread:$0]  (%p2743_p2), %s2645_s2, 256, %s2643_s28, %s1426_s21, %s2152_s14, %s2152_s14, %s2153_s30  }
 0xb02 PF: > { %s2744_s10 = sld [smem:[#allocation17_spill]]  ;;  %s2745_s15 = sld [smem:[#allocation18_spill]] }
 0xb03   : > { %p2747_p6 = scmp.ge.s32.totalorder %s2137_s20, 2 }
 0xb08   : > { %s1462_s29 = sand.u32 1, %s2744_s10   ;;  %p2746_p8 = scmp.ne.s32.totalorder %s2745_s15, 0 }
 0xb09   : > { %s1463_s13 = scalar_lea.sflag [#allocation4], %s1462_s29 }
 0xb0a   : > { %p1821_p10 = pnand %p2747_p6, %p2746_p8 }
 0xb0c   : > { %2120 = dma.done.wait (!%p1821_p10), %s1463_s13, 256  }
 0xb0d   : > { %2122 = vsyncadd (!%p1821_p10), %s1463_s13, 4294967040  ;;  %p29_p13 = scmp.ge.s32.totalorder %s2354_s24, 4   ;;  %s2748_s17 = smov %s2129_s18 }
 0xb0e   : > { %s2749_s18 = smov %s2133_s19  ;;  %s2750_s19 = smov %s2364_s11 }
 0xb0f   : > { %s2751_s20 = smov %s2354_s24  ;;  %31 = sbr.rel (!%p29_p13) target bundleno = 16 (0x10), region = 148 }
 0xb16   :  { %1476 = vsyncpa [#allocation3], 1 }
 0xb17   :  { %1478 = vsyncpa [#allocation3 + $0x1], 1 }
 0xb18   :  { %1479 = vsyncpa [#allocation6], 1 }
 0xb19   :  { %1481 = vsyncpa [#allocation6 + $0x1], 1 }
 0xb1a   :  { %1482 = vsyncpa [#allocation9], 1 }
 0xb1b   :  { %1483 = vsyncpa [#allocation4], 1 }
 0xb1c   :  { %1485 = vsyncpa [#allocation4 + $0x1], 1 }

</bundles_post_ra>
